<compile_context>
chip_gen: v7x
topology: tpu7x:2x2x1
jax: 0.10.0
libtpu: 0.0.40
codegen_flags: <defaults>
</compile_context>

<pallas_src>
import jax
import jax.numpy as jnp
from jax.experimental import pallas as pl
from jax.experimental.pallas import tpu as pltpu

HIDDEN = 64                 # fixed by the module: Linear(1,64) -> Linear(64,64) -> Linear(64,n)
LANES = 128                 # TPU lane width (f32)
SUBLANES = 8                # TPU sublane granule (f32)
HPAD = 128                  # hidden size padded to a full lane width
PROWS = 8 + HPAD + HPAD     # packed-parameter buffer rows: [small params | W2 | W3] = 264
MAX_TB = 1024               # batch rows per grid step for the large-N path


def _round_up(x, m):
    return ((x + m - 1) // m) * m


def _initnet_kernel(x_ref, p_ref, out_ref):
    """x_ref: (TB, 1) f32, p_ref: (264, 128) packed params, out_ref: (TB, 128)."""
    x = x_ref[...]                            # (TB, 1)

    w1_row = p_ref[0:1, :]                    # (1, 128)  first-layer weight row (lanes 64: are 0)
    b1 = p_ref[1:2, :]                        # (1, 128)
    b2 = p_ref[2:3, :]                        # (1, 128)
    b3 = p_ref[3:4, :]                        # (1, 128)
    w2 = p_ref[8:8 + HPAD, :]                 # (128, 128) zero-padded Linear(64,64)
    w3 = p_ref[8 + HPAD:8 + 2 * HPAD, :]      # (128, 128) zero-padded Linear(64,n)

    # Layer 1: Linear(1, 64) + ReLU.  K=1 contraction -> pure VPU broadcast mul-add.
    # Lanes 64:128 stay exactly zero (zero weight row, zero bias).
    h1 = jnp.maximum(x * w1_row + b1, 0.0)                                   # (TB, 128)

    # Layer 2: Linear(64, 64) + ReLU on the MXU (zero-padded rows/cols contribute nothing).
    h2 = jnp.dot(h1, w2, preferred_element_type=jnp.float32) + b2
    h2 = jnp.maximum(h2, 0.0)                                                # (TB, 128)

    # Layer 3: Linear(64, n) + Softplus (PyTorch default beta=1, threshold=20).
    z = jnp.dot(h2, w3, preferred_element_type=jnp.float32) + b3             # (TB, 128)
    sp = jnp.where(z > 20.0, z, jnp.log1p(jnp.exp(z)))

    # Lane-dense, sublane-dense store: full (TB, 128) vregs, unmasked vst.
    out_ref[...] = sp + 1e-6


def init_params(n, key):
    """Deterministic synthetic parameters matching nn.Linear shapes.

    Weights stored transposed relative to PyTorch ((in, out) instead of (out, in)) so the
    math is y = x @ W + b.  Uniform(-1/sqrt(fan_in), 1/sqrt(fan_in)) like PyTorch default.
    """
    k1, k2, k3, k4, k5, k6 = jax.random.split(key, 6)

    def lin(kw, kb, fan_in, fan_out):
        bound = 1.0 / jnp.sqrt(float(fan_in))
        w = jax.random.uniform(kw, (fan_in, fan_out), jnp.float32, -bound, bound)
        b = jax.random.uniform(kb, (fan_out,), jnp.float32, -bound, bound)
        return w, b

    w1, b1 = lin(k1, k2, 1, HIDDEN)
    w2, b2 = lin(k3, k4, HIDDEN, HIDDEN)
    w3, b3 = lin(k5, k6, HIDDEN, n)
    return (w1, b1, w2, b2, w3, b3)


def prepack_params(params, n):
    """Run ONCE at init time.  Packs all parameters into one lane-dense (264, 128) buffer."""
    assert n <= LANES, "packed-parameter layout assumes n <= 128 (typical n ~ 8-30)"
    w1, b1, w2, b2, w3, b3 = params

    p = jnp.zeros((PROWS, LANES), jnp.float32)
    p = p.at[0, 0:HIDDEN].set(w1.reshape(HIDDEN).astype(jnp.float32))
    p = p.at[1, 0:HIDDEN].set(b1.reshape(HIDDEN).astype(jnp.float32))
    p = p.at[2, 0:HIDDEN].set(b2.reshape(HIDDEN).astype(jnp.float32))
    p = p.at[3, 0:n].set(b3.reshape(n).astype(jnp.float32))
    p = p.at[8:8 + HIDDEN, 0:HIDDEN].set(w2.astype(jnp.float32))
    p = p.at[8 + HPAD:8 + HPAD + HIDDEN, 0:n].set(w3.astype(jnp.float32))
    return p


def initnet_forward(M, packed_params, n):
    """M: shape (N,) — one scalar noise level per batch element. Returns (N, 1, 1, n)."""
    N = M.shape[0]

    # Batch tile: whole batch in one step when small, 1024-row tiles when large.
    TB = min(MAX_TB, _round_up(max(N, 1), SUBLANES))
    N_pad = _round_up(max(N, 1), TB)

    # Single XLA op on the per-call critical path: pad + reshape.
    x = jnp.pad(M.astype(jnp.float32), (0, N_pad - N)).reshape(N_pad, 1)

    out = pl.pallas_call(
        _initnet_kernel,
        out_shape=jax.ShapeDtypeStruct((N_pad, LANES), jnp.float32),
        grid=(N_pad // TB,),
        in_specs=[
            pl.BlockSpec((TB, 1), lambda i: (i, 0)),          # streamed batch scalars
            pl.BlockSpec((PROWS, LANES), lambda i: (0, 0)),   # resident packed params
        ],
        out_specs=pl.BlockSpec((TB, LANES), lambda i: (i, 0)),
        compiler_params=pltpu.CompilerParams(
            dimension_semantics=("parallel",)),
    )(x, packed_params)

    # rho1_iters = h[:, :, 0:n].view(N, 1, 1, n)  (drop batch / lane padding here)
    return out[:N, :n].reshape(N, 1, 1, n)


def _reference(M, params, n):
    x = M.astype(jnp.float32).reshape(-1, 1)
    w1, b1, w2, b2, w3, b3 = params
    h1 = jnp.maximum(x @ w1 + b1.reshape(1, -1), 0.0)
    h2 = jnp.maximum(h1 @ w2 + b2.reshape(1, -1), 0.0)
    z = h2 @ w3 + b3.reshape(1, -1)
    sp = jnp.where(z > 20.0, z, jnp.log1p(jnp.exp(z)))
    return (sp + 1e-6).reshape(-1, 1, 1, n)


if __name__ == "__main__":
    n = 8       # number of iterations the net predicts penalty params for
    N = 2       # batch size

    key = jax.random.PRNGKey(0)
    kp, km = jax.random.split(key)
    params = init_params(n, kp)
    packed = prepack_params(params, n)            # done ONCE, off the forward path
    # M: per-image noise level scalars (e.g. photon counts), shape (N,)
    M = jax.random.uniform(km, (N,), jnp.float32, 1.0, 60.0)

    out = initnet_forward(M, packed, n)
    out = jax.block_until_ready(out)

    ref = _reference(M, params, n)
    assert out.shape == (N, 1, 1, n), out.shape
    assert jnp.allclose(out, ref, atol=1e-5, rtol=1e-5), "mismatch vs reference"

    print("KERNEL_OK")
</pallas_src>

<mosaic_0001>
module attributes {stable_mosaic.version = 11 : i64} {
  func.func @_initnet_kernel(%arg0: i32, %arg1: memref<8x1xf32, #tpu.memory_space<vmem>>, %arg2: memref<264x128xf32, #tpu.memory_space<vmem>>, %arg3: memref<8x128xf32, #tpu.memory_space<vmem>>) attributes {dimension_semantics = [#tpu.dimension_semantics<parallel>], iteration_bounds = array<i64: 1>, scalar_prefetch = 0 : i64, scratch_operands = 0 : i64, tpu.core_type = #tpu.core_type<tc>, window_params = [{transform_indices = @transform_0, window_bounds = array<i64: 8, 1>}, {pipeline_mode = #tpu.pipeline_mode<synchronous>, transform_indices = @transform_1, window_bounds = array<i64: 264, 128>}, {transform_indices = @transform_2, window_bounds = array<i64: 8, 128>}]} {
    %c0 = arith.constant 0 : index
    %c0_0 = arith.constant 0 : index
    %0 = vector.load %arg1[%c0, %c0_0] : memref<8x1xf32, #tpu.memory_space<vmem>>, vector<8x1xf32>
    %c0_1 = arith.constant 0 : index
    %c0_2 = arith.constant 0 : index
    %1 = vector.load %arg2[%c0_1, %c0_2] : memref<264x128xf32, #tpu.memory_space<vmem>>, vector<1x128xf32>
    %c1 = arith.constant 1 : index
    %c0_3 = arith.constant 0 : index
    %2 = vector.load %arg2[%c1, %c0_3] : memref<264x128xf32, #tpu.memory_space<vmem>>, vector<1x128xf32>
    %c2 = arith.constant 2 : index
    %c0_4 = arith.constant 0 : index
    %3 = vector.load %arg2[%c2, %c0_4] : memref<264x128xf32, #tpu.memory_space<vmem>>, vector<1x128xf32>
    %c3 = arith.constant 3 : index
    %c0_5 = arith.constant 0 : index
    %4 = vector.load %arg2[%c3, %c0_5] : memref<264x128xf32, #tpu.memory_space<vmem>>, vector<1x128xf32>
    %c8 = arith.constant 8 : index
    %c0_6 = arith.constant 0 : index
    %5 = vector.load %arg2[%c8, %c0_6] : memref<264x128xf32, #tpu.memory_space<vmem>>, vector<128x128xf32>
    %c136 = arith.constant 136 : index
    %c0_7 = arith.constant 0 : index
    %6 = vector.load %arg2[%c136, %c0_7] : memref<264x128xf32, #tpu.memory_space<vmem>>, vector<128x128xf32>
    %7 = vector.broadcast %0 : vector<8x1xf32> to vector<8x128xf32>
    %8 = vector.broadcast %1 : vector<1x128xf32> to vector<8x128xf32>
    %9 = arith.mulf %7, %8 : vector<8x128xf32>
    %10 = vector.broadcast %2 : vector<1x128xf32> to vector<8x128xf32>
    %11 = arith.addf %9, %10 : vector<8x128xf32>
    %cst = arith.constant 0.000000e+00 : f32
    %12 = vector.broadcast %cst : f32 to vector<8x128xf32>
    %13 = arith.maximumf %11, %12 : vector<8x128xf32>
    %cst_8 = arith.constant dense<0.000000e+00> : vector<8x128xf32>
    %14 = tpu.matmul %13, %5, %cst_8 {dimension_numbers = #tpu.dot_dimension_numbers<[1], [0], [0], [1], [0, 0, 1, 1], [], []>} : vector<8x128xf32>, vector<128x128xf32>, vector<8x128xf32> -> vector<8x128xf32>
    %15 = vector.broadcast %3 : vector<1x128xf32> to vector<8x128xf32>
    %16 = arith.addf %14, %15 : vector<8x128xf32>
    %cst_9 = arith.constant 0.000000e+00 : f32
    %17 = vector.broadcast %cst_9 : f32 to vector<8x128xf32>
    %18 = arith.maximumf %16, %17 : vector<8x128xf32>
    %cst_10 = arith.constant dense<0.000000e+00> : vector<8x128xf32>
    %19 = tpu.matmul %18, %6, %cst_10 {dimension_numbers = #tpu.dot_dimension_numbers<[1], [0], [0], [1], [0, 0, 1, 1], [], []>} : vector<8x128xf32>, vector<128x128xf32>, vector<8x128xf32> -> vector<8x128xf32>
    %20 = vector.broadcast %4 : vector<1x128xf32> to vector<8x128xf32>
    %21 = arith.addf %19, %20 : vector<8x128xf32>
    %cst_11 = arith.constant 2.000000e+01 : f32
    %22 = vector.broadcast %cst_11 : f32 to vector<8x128xf32>
    %23 = arith.cmpf ogt, %21, %22 : vector<8x128xf32>
    %24 = math.exp %21 : vector<8x128xf32>
    %25 = math.log1p %24 : vector<8x128xf32>
    %26 = arith.select %23, %21, %25 : vector<8x128xi1>, vector<8x128xf32>
    %cst_12 = arith.constant 9.99999997E-7 : f32
    %27 = vector.broadcast %cst_12 : f32 to vector<8x128xf32>
    %28 = arith.addf %26, %27 : vector<8x128xf32>
    %c0_13 = arith.constant 0 : index
    %c0_14 = arith.constant 0 : index
    %29 = vector.load %arg3[%c0_13, %c0_14] : memref<8x128xf32, #tpu.memory_space<vmem>>, vector<8x128xf32>
    tpu.vector_store %arg3[%c0_13, %c0_14], %28 {strides = array<i32>} : memref<8x128xf32, #tpu.memory_space<vmem>>, vector<8x128xf32>,
    return
  }
  func.func @transform_0(%arg0: i32) -> (i32, i32) {
    %c0_i32 = arith.constant 0 : i32
    %c0_i32_0 = arith.constant 0 : i32
    return %arg0, %c0_i32 : i32, i32
  }
  func.func @transform_1(%arg0: i32) -> (i32, i32) {
    %c0_i32 = arith.constant 0 : i32
    %c0_i32_0 = arith.constant 0 : i32
    %c0_i32_1 = arith.constant 0 : i32
    return %c0_i32, %c0_i32_0 : i32, i32
  }
  func.func @transform_2(%arg0: i32) -> (i32, i32) {
    %c0_i32 = arith.constant 0 : i32
    %c0_i32_0 = arith.constant 0 : i32
    return %arg0, %c0_i32 : i32, i32
  }
}

</mosaic_0001>

<bundles_post_ra>
// kernel: tpu_custom_call.1
= control target key start
LH: loop header
LB: loop body
LE: loop exit
PB: predicated region body
PF: predicated region fallthrough
CT: control target
= control target key end

     0   :  { %7 = vsyncpa [#allocation3], 0  ;;  %s541_s0 = inlined_call_operand.vmem [shape: f32[8,1], index: 0, kind: input, shape index: {}]   ;;  %s542_s1 = inlined_call_operand.hbm [shape: f32[264,128], index: 1, kind: input, shape index: {}]   ;;  %s543_s2 = inlined_call_operand.hbm [shape: f32[8,128], index: 2, kind: output, shape index: {}]  }
   0x1   :  { %8 = vsyncpa [#allocation4], 0  ;;  %s475_s9 = smov [#allocation2]   ;;  %s427_s13 = scalar_lea.hbm %s542_s1, 4224 }
   0x2   :  { %s16_s10 = sshll.u32 %s475_s9, 4  ;;  %p428_p0 = scmp.ne.s32.totalorder %s542_s1, %s427_s13  ;;  %s17_s10 = int_to_ptr.vmem [resolvable:$true] %s16_s10 }
   0x3   :  { %p431_p1 = scmp.lt.u32.totalorder %s427_s13, %s542_s1 }
   0x5   :  { %p433_p2 = pnand %p431_p1, %p428_p0 }
   0x7   :  { %436 = shalt.err (!%p433_p2)
}
   0x8   :  { %s437_s18 = scalar_lea.vmem %s17_s10, 4224  ;;  %p442_p4 = scmp.lt.s32.totalorder %s17_s10, %s17_s10 }
   0x9   :  { %p438_p3 = scmp.ne.s32.totalorder %s17_s10, %s437_s18  ;;  %p443_p5 = scmp.lt.s32.totalorder %s437_s18, %s437_s18 }
   0xb   :  { %p444_p6 = por %p443_p5, %p442_p4 }
   0xd   :  { %p445_p7 = pnand %p444_p6, %p438_p3 }
   0xf   :  { %448 = shalt.err (!%p445_p7)
}
  0x10   :  { %s476_s19 = smov 128   ;;  %s477_s20 = smov 8  }
  0x11   :  { %22 = dma.hbm_to_vmem [thread:$0]  %s542_s1, 4224, %s17_s10, [#allocation3], %s476_s19, %s476_s19, %s477_s20  }
  0x12   :  { %471 = dma.done.wait [#allocation3], 4224  }
  0x13   :  { %472 = vsyncadd [#allocation3], 4294963072  ;;  %v478_v0 = vmov 0   ;;  %v479_v1 = vmov 0.0|0.0   ;;  %v26_v2 = vld [vmem:[%s541_s0] sm:$0xff]  ;;  %v31_v3 = vld [vmem:[#allocation2 + $0x8] sm:$0xff] }
  0x14   :  { %422 = vset.pattern.permute.xlu0 %v478_v0  ;;  %366 = vmatprep.subr.bf16.mxu0 %v479_v1  ;;  %v32_v4 = vld [vmem:[#allocation2 + $0x10] sm:$0xff]  ;;  %v33_v6 = vld [vmem:[#allocation2 + $0x18] sm:$0xff]  ;;  %v34_v7 = vld [vmem:[#allocation2 + $0x20] sm:$0xff]  ;;  %vm480_vm0 = vmmov 0   ;;  %v481_v12 = vmov 0.0   ;;  %s482_s0 = smov [#allocation5]  }
  0x15   :  { %390 = vmatprep.subr.bf16.mxu1 %v479_v1  ;;  %65 = vperm.xlu0 %422, %v26_v2   ;;  %v367_v5 = vpack.c.bf16 %v32_v4, %v31_v3  ;;  %v370_v8 = vpack.c.bf16 %v34_v7, %v33_v6  ;;  %v35_v9 = vld [vmem:[#allocation2 + $0x28] sm:$0xff]  ;;  %v36_v10 = vld [vmem:[#allocation2 + $0x30] sm:$0xff]  ;;  %v49_v15 = vld [vmem:[#allocation2 + $0x98] sm:$0xff]  ;;  %s249_s1 = sshll.u32 %s482_s0, 4  ;;  %s250_s1 = int_to_ptr.vmem [resolvable:$true] %s249_s1 }
  0x16   :  { %v373_v11 = vpack.c.bf16 %v36_v10, %v35_v9  ;;  %328 = vmatprep.mubr.msk.f32.mxu0 %vm480_vm0, %v481_v12  ;;  %v47_v13 = vld [vmem:[#allocation2 + $0x88] sm:$0xff]  ;;  %v48_v14 = vld [vmem:[#allocation2 + $0x90] sm:$0xff]  ;;  %v37_v16 = vld [vmem:[#allocation2 + $0x38] sm:$0xff]  ;;  %363 = vmatprep.mubr.msk.f32.mxu1 %vm480_vm0, %v481_v12  ;;  %s449_s25 = scalar_lea.vmem %s250_s1, 128  ;;  %p454_p9 = scmp.lt.s32.totalorder %s250_s1, %s250_s1 }
  0x17   :  { %368 = vmatpush3.bf16.msra.mxu0 %v367_v5  ;;  %v38_v17 = vld [vmem:[#allocation2 + $0x40] sm:$0xff]  ;;  %v391_v18 = vpack.c.bf16 %v48_v14, %v47_v13  ;;  %v51_v22 = vld [vmem:[#allocation2 + $0xa8] sm:$0xff]  ;;  %v52_v23 = vld [vmem:[#allocation2 + $0xb0] sm:$0xff]  ;;  %p450_p8 = scmp.ne.s32.totalorder %s250_s1, %s449_s25  ;;  %p455_p10 = scmp.lt.s32.totalorder %s449_s25, %s449_s25 }
  0x18   :  { %369 = vmatprep.subr.bf16.mxu0 %v479_v1  ;;  %v50_v19 = vld [vmem:[#allocation2 + $0xa0] sm:$0xff]  ;;  %v376_v21 = vpack.c.bf16 %v38_v17, %v37_v16  ;;  %v39_v24 = vld [vmem:[#allocation2 + $0x48] sm:$0xff]  ;;  %v40_v25 = vld [vmem:[#allocation2 + $0x50] sm:$0xff]  ;;  %v397_v26 = vpack.c.bf16 %v52_v23, %v51_v22 }
  0x19   :  { %392 = vmatpush3.bf16.msra.mxu1 %v391_v18  ;;  %v394_v20 = vpack.c.bf16 %v50_v19, %v49_v15  ;;  %v379_v27 = vpack.c.bf16 %v40_v25, %v39_v24  ;;  %v53_v28 = vld [vmem:[#allocation2 + $0xb8] sm:$0xff]  ;;  %v54_v29 = vld [vmem:[#allocation2 + $0xc0] sm:$0xff]  ;;  %v55_v34 = vld [vmem:[#allocation2 + $0xc8] sm:$0xff]  ;;  %p456_p11 = por %p455_p10, %p454_p9 }
  0x1a   :  { %393 = vmatprep.subr.bf16.mxu1 %v479_v1  ;;  %v41_v30 = vld [vmem:[#allocation2 + $0x58] sm:$0xff]  ;;  %v42_v31 = vld [vmem:[#allocation2 + $0x60] sm:$0xff]  ;;  %v400_v32 = vpack.c.bf16 %v54_v29, %v53_v28  ;;  %v56_v35 = vld [vmem:[#allocation2 + $0xd0] sm:$0xff] }
  0x1b   :  { %371 = vmatpush3.bf16.msra.mxu0 %v370_v8  ;;  %v382_v33 = vpack.c.bf16 %v42_v31, %v41_v30  ;;  %v43_v36 = vld [vmem:[#allocation2 + $0x68] sm:$0xff]  ;;  %v44_v37 = vld [vmem:[#allocation2 + $0x70] sm:$0xff]  ;;  %v403_v38 = vpack.c.bf16 %v56_v35, %v55_v34  ;;  %v57_v40 = vld [vmem:[#allocation2 + $0xd8] sm:$0xff]  ;;  %p457_p12 = pnand %p456_p11, %p450_p8 }
  0x1c   :  { %372 = vmatprep.subr.bf16.mxu0 %v479_v1  ;;  %v385_v39 = vpack.c.bf16 %v44_v37, %v43_v36  ;;  %v58_v41 = vld [vmem:[#allocation2 + $0xe0] sm:$0xff]  ;;  %v45_v42 = vld [vmem:[#allocation2 + $0x78] sm:$0xff]  ;;  %v59_v46 = vld [vmem:[#allocation2 + $0xe8] sm:$0xff] }
  0x1d   :  { %395 = vmatpush3.bf16.msra.mxu1 %v394_v20  ;;  %v46_v43 = vld [vmem:[#allocation2 + $0x80] sm:$0xff]  ;;  %v406_v44 = vpack.c.bf16 %v58_v41, %v57_v40  ;;  %v60_v47 = vld [vmem:[#allocation2 + $0xf0] sm:$0xff]  ;;  %v61_v55 = vld [vmem:[#allocation2 + $0xf8] sm:$0xff] }
  0x1e   :  { %396 = vmatprep.subr.bf16.mxu1 %v479_v1  ;;  %v388_v45 = vpack.c.bf16 %v46_v43, %v45_v42  ;;  %v409_v48 = vpack.c.bf16 %v60_v47, %v59_v46  ;;  %v258_v49 = vld [vmem:[#allocation2] ss:$0 sm:$0xff]  ;;  %v259_v50 = vld [vmem:[#allocation2 + $0x1] ss:$0 sm:$0xff]  ;;  %v260_v58 = vld [vmem:[#allocation2 + $0x2] ss:$0 sm:$0xff] }
  0x1f   :  { %374 = vmatpush3.bf16.msra.mxu0 %v373_v11  ;;  %v62_v56 = vld [vmem:[#allocation2 + $0x100] sm:$0xff] }
  0x20   :  { %375 = vmatprep.subr.bf16.mxu0 %v479_v1  ;;  %v412_v57 = vpack.c.bf16 %v62_v56, %v61_v55  ;;  %v261_v63 = vld [vmem:[#allocation2 + $0x3] ss:$0 sm:$0xff] }
  0x21   :  { %398 = vmatpush3.bf16.msra.mxu1 %v397_v26 }
  0x22   :  { %399 = vmatprep.subr.bf16.mxu1 %v479_v1 }
  0x23   :  { %377 = vmatpush3.bf16.msra.mxu0 %v376_v21 }
  0x24   :  { %378 = vmatprep.subr.bf16.mxu0 %v479_v1 }
  0x25   :  { %401 = vmatpush3.bf16.msra.mxu1 %v400_v32 }
  0x26   :  { %402 = vmatprep.subr.bf16.mxu1 %v479_v1 }
  0x27   :  { %380 = vmatpush3.bf16.msra.mxu0 %v379_v27 }
  0x28   :  { %381 = vmatprep.subr.bf16.mxu0 %v479_v1 }
  0x29   :  { %404 = vmatpush3.bf16.msra.mxu1 %v403_v38 }
  0x2a   :  { %405 = vmatprep.subr.bf16.mxu1 %v479_v1 }
  0x2b   :  { %383 = vmatpush3.bf16.msra.mxu0 %v382_v33 }
  0x2c   :  { %384 = vmatprep.subr.bf16.mxu0 %v479_v1 }
  0x2d   :  { %407 = vmatpush3.bf16.msra.mxu1 %v406_v44 }
  0x2e   :  { %408 = vmatprep.subr.bf16.mxu1 %v479_v1 }
  0x2f   :  { %386 = vmatpush3.bf16.msra.mxu0 %v385_v39 }
  0x30   :  { %387 = vmatprep.subr.bf16.mxu0 %v479_v1 }
  0x31   :  { %410 = vmatpush3.bf16.msra.mxu1 %v409_v48 }
  0x32   :  { %411 = vmatprep.subr.bf16.mxu1 %v479_v1 }
  0x33   :  { %389 = vmatpush3.bf16.msra.mxu0 %v388_v45 }
  0x35   :  { %413 = vmatpush3.bf16.msra.mxu1 %v412_v57 }
  0x94   :  { %v66_v51 = vpop.permute.xlu0 %65 }
  0x95   :  { %v72_v52 = vmul.f32 %v258_v49, %v66_v51 }
  0x97   :  { %v77_v53 = vadd.f32 %v259_v50, %v72_v52 }
  0x99   :  { %v78_v54 = vmax.f32 %v77_v53, 0.0 }
  0x9b   :  { %329 = vmatmul.mubr.f32.vlgmr.msra.gmra.mrb[0].mxu0 %v78_v54 }
 0x16e   :  { %v149_v59 = vpop.f32.mrb[0].mxu0 }
 0x16f   :  { %v150_v60 = vadd.f32 %v260_v58, %v149_v59  ;;  %v330_v61 = vpop.f32.mrb[1].mxu0 }
 0x171   :  { %v153_v62 = vmax.f32 %v150_v60, 0.0 }
 0x173   :  { %364 = vmatmul.mubr.f32.vlgmr.msra.gmra.mrb[0].mxu1 %v153_v62 }
 0x246   :  { %v224_v0 = vpop.f32.mrb[0].mxu1 }
 0x247   :  { %v225_v1 = vadd.f32 %v261_v63, %v224_v0  ;;  %v365_v2 = vpop.f32.mrb[1].mxu1 }
 0x249   :  { %v229_v3 = vmul.f32 1.442695, %v225_v1  ;;  %vm228_vm2 = vcmp.gt.f32.partialorder %v225_v1, 20.0 }
 0x24b   :  { %423 = vpow2.f32 %v229_v3 }
 0x255   :  { %v424_v4 = vpop.eup %423 }
 0x256   :  { %v231_v5 = vadd.f32 1.0, %v424_v4  ;;  %v234_v6 = vmul.f32 -0.5, %v424_v4  ;;  %v237_v8 = vand.u32 2147483647, %v424_v4 }
 0x258   :  { %425 = vlog2.f32 %v231_v5  ;;  %v235_v7 = vadd.f32 1.0, %v234_v6  ;;  %vm238_vm1 = vcmp.lt.f32.partialorder %v237_v8, 0.0004427343 }
 0x25a   :  { %v236_v11 = vmul.f32 %v424_v4, %v235_v7 }
 0x262   :  { %v426_v9 = vpop.eup %425 }
 0x263   :  { %v233_v10 = vmul.f32 0.6931472, %v426_v9 }
 0x265   :  { %v239_v12 = vsel %vm238_vm1, %v236_v11, %v233_v10 }
 0x266   :  { %v240_v13 = vsel %vm228_vm2, %v225_v1, %v239_v12 }
 0x267   :  { %v241_v14 = vadd.f32 1e-06, %v240_v13 }
 0x269   :  { %242 = vst [vmem:[#allocation5] sm:$0xff] %v241_v14 }
 0x26a   :  { %460 = shalt.err (!%p457_p12)
}
 0x26b   :  { %s461_s28 = scalar_lea.hbm %s543_s2, 128 }
 0x26c   :  { %p462_p13 = scmp.ne.s32.totalorder %s543_s2, %s461_s28  ;;  %p465_p0 = scmp.lt.u32.totalorder %s461_s28, %s543_s2 }
 0x26e   :  { %p467_p1 = pnand %p465_p0, %p462_p13 }
 0x270   :  { %470 = shalt.err (!%p467_p1)
}
 0x271   :  { %252 = dma.vmem_to_hbm [thread:$0]  %s250_s1, 128, %s543_s2, [#allocation4]  }
 0x272   :  { %473 = dma.done.wait [#allocation4], 128  }
 0x273   :  { %474 = vsyncadd [#allocation4], 4294967168 }
 0x274   :  { %256 = vsyncpa [#allocation3], 1 }
 0x275   :  { %257 = vsyncpa [#allocation4], 1 }

</bundles_post_ra>
